<compile_context>
chip_gen: v6e
topology: v6e:2x2x1
jax: 0.10.0
libtpu: 0.0.40
codegen_flags: <defaults>
</compile_context>

<pallas_src>
import jax
import jax.numpy as jnp
from jax.experimental import pallas as pl
from jax.experimental.pallas import tpu as pltpu

EPS = 1e-6
_ROW_GRAN = 32  # row-tile granule: covers f32 (8) and bf16 (16) sublane tiling


def _round_up(x, m):
    return (x + m - 1) // m * m


def _vmem_budget_bytes():
    """Generation-aware VMEM cap: ~75% of physical, capped at 96 MiB.

    v5e/v6e (128 MiB physical) -> 96 MiB; v7x (64 MiB per core) -> 48 MiB.
    """
    cap = 64 * 1024 * 1024
    try:
        cap = int(getattr(pltpu.get_tpu_info(), "vmem_capacity_bytes", cap))
    except Exception:
        pass
    return max(32 * 1024 * 1024, min(cap * 3 // 4, 96 * 1024 * 1024))


def _make_kernel(d_true, d_pad):
    """Fused residual-Linear + LayerNorm over a [TILE_R, d_pad] row tile."""
    need_mask = d_pad != d_true
    inv_d = 1.0 / d_true
    inv_dm1 = 1.0 / max(d_true - 1, 1)

    def kernel(x_ref, w_ref, bw_ref, a2_ref, b2_ref, o_ref):
        # Load the x tile ONCE; reuse for the MXU operand and the residual.
        xv = x_ref[...]                                            # [TILE_R, Dp] (bf16 I/O)

        # Sublayer Linear(D, D): bf16 operands into the MXU, f32 accumulation.
        sub = jnp.dot(
            xv.astype(jnp.bfloat16),
            w_ref[...],                                            # bf16 (cast in wrapper)
            preferred_element_type=jnp.float32,
        ) + bw_ref[...]                                            # f32 bias, no extra cast

        # Residual connection in f32.
        y = xv.astype(jnp.float32) + sub                           # [TILE_R, Dp]

        # Final LayerNorm, torch semantics: unbiased std (ddof=1), eps added to std.
        # Two-pass moments (numerically safer than E[y^2]-E[y]^2, free here).
        mean = jnp.sum(y, axis=-1, keepdims=True) * inv_d          # pad cols of y are 0
        c = y - mean
        if need_mask:
            lane = jax.lax.broadcasted_iota(jnp.int32, y.shape, dimension=y.ndim - 1)
            c = jnp.where(lane < d_true, c, 0.0)
        var = jnp.sum(c * c, axis=-1, keepdims=True) * inv_dm1
        inv = 1.0 / (jnp.sqrt(var) + EPS)                          # exact reciprocal
        out = a2_ref[...] * (c * inv) + b2_ref[...]

        o_ref[...] = out.astype(o_ref.dtype)

    return kernel


def encoder_forward(x, w, b, a_2, b_2, *, tile_r=None, io_dtype=jnp.bfloat16):
    """Encoder forward (N=1 residual-Linear layer + final LayerNorm).

    x: [B, S, D]; w: [D, D] (input-major, y = x @ w + b); b / a_2 / b_2: [D].
    Returns [B, S, D] in `io_dtype` (bf16 by default to halve HBM traffic).
    """
    B, S, D = x.shape
    R = B * S
    Dp = _round_up(D, 128)                      # lane-dense feature axis
    vmem_budget = _vmem_budget_bytes()

    # --- Row-tile sizing -----------------------------------------------------
    if tile_r is None:
        # Per-row VMEM in flight: bf16 x + bf16 out (double-buffered) + ~3 f32
        # intermediates (sub, y, centered). Use ~half the budget; keep the other
        # half for the resident weight, params and compiler headroom.
        per_row = Dp * (2 * 2 + 2 * 2 + 3 * 4)
        tile_r = (vmem_budget // 2 - 4 * Dp * Dp) // per_row
        tile_r = max(256, min(4096, tile_r))
    r_gran = _round_up(R, _ROW_GRAN)
    tile_r = max(_ROW_GRAN, min(_round_up(int(tile_r), _ROW_GRAN), r_gran))
    # Guarantee >=2 grid steps when possible so both v7x TensorCores get work.
    if r_gran >= 2 * _ROW_GRAN and tile_r > r_gran // 2:
        tile_r = _round_up(r_gran // 2, _ROW_GRAN)
    r_pad = _round_up(R, tile_r)

    # --- Operand prep (pad rows + feature axis; cast dtypes once) -------------
    x2 = x.reshape(R, D).astype(io_dtype)
    if r_pad != R or Dp != D:
        # Padded rows/cols are computed but sliced off; zero feature padding keeps
        # the padded columns of y exactly zero (zero-padded W/b), so the masked
        # LayerNorm reduction stays exact.
        x2 = jnp.pad(x2, ((0, r_pad - R), (0, Dp - D)))

    w_bf = w.astype(jnp.bfloat16)
    bw = b.astype(jnp.float32)
    a2 = a_2.astype(jnp.float32)
    b2 = b_2.astype(jnp.float32)
    if Dp != D:
        w_bf = jnp.pad(w_bf, ((0, Dp - D), (0, Dp - D)))
        bw = jnp.pad(bw, (0, Dp - D))
        a2 = jnp.pad(a2, (0, Dp - D))
        b2 = jnp.pad(b2, (0, Dp - D))
    bw = bw.reshape(1, Dp)
    a2 = a2.reshape(1, Dp)
    b2 = b2.reshape(1, Dp)

    grid = (r_pad // tile_r,)

    out = pl.pallas_call(
        _make_kernel(D, Dp),
        out_shape=jax.ShapeDtypeStruct((r_pad, Dp), io_dtype),
        grid=grid,
        in_specs=[
            pl.BlockSpec((tile_r, Dp), lambda i: (i, 0)),   # x tile (pipelined)
            pl.BlockSpec((Dp, Dp), lambda i: (0, 0)),       # W: VMEM-resident
            pl.BlockSpec((1, Dp), lambda i: (0, 0)),        # Linear bias (f32)
            pl.BlockSpec((1, Dp), lambda i: (0, 0)),        # LN gain a_2
            pl.BlockSpec((1, Dp), lambda i: (0, 0)),        # LN bias b_2
        ],
        out_specs=pl.BlockSpec((tile_r, Dp), lambda i: (i, 0)),
        compiler_params=pltpu.CompilerParams(
            dimension_semantics=("parallel",),
            vmem_limit_bytes=vmem_budget,
        ),
    )(x2, w_bf, bw, a2, b2)

    return out[:R, :D].reshape(B, S, D)


def reference(x, w, b, a_2, b_2):
    """Pure-JAX f32 reference with torch LayerNorm semantics."""
    y = x + (x @ w + b)
    mean = jnp.mean(y, axis=-1, keepdims=True)
    std = jnp.std(y, axis=-1, keepdims=True, ddof=1)
    return a_2 * (y - mean) / (std + EPS) + b_2


if __name__ == "__main__":
    # Small but lane-dense shapes: D multiple of 128; enough rows for a 2-step grid.
    B, S, D = 2, 64, 128
    key = jax.random.PRNGKey(0)
    kx, kw, kb = jax.random.split(key, 3)

    x = jax.random.normal(kx, (B, S, D), dtype=jnp.float32)

    # Deterministic "sublayer" Linear(D, D) params (W stored as [in, out]).
    w = jax.random.normal(kw, (D, D), dtype=jnp.float32) * 0.05
    b = jax.random.normal(kb, (D,), dtype=jnp.float32) * 0.05

    # LayerNorm params per module __init__: ones / zeros.
    a_2 = jnp.ones((D,), dtype=jnp.float32)
    b_2 = jnp.zeros((D,), dtype=jnp.float32)

    out = encoder_forward(x, w, b, a_2, b_2)          # auto tile_r -> grid = (2,)
    out = jax.block_until_ready(out)

    ref = reference(x, w, b, a_2, b_2)
    assert out.shape == (B, S, D)
    out_f32 = out.astype(jnp.float32)
    max_err = jnp.max(jnp.abs(out_f32 - ref))
    # bf16 activation I/O + bf16 MXU operands -> slightly loosened tolerance.
    assert jnp.allclose(out_f32, ref, atol=3e-2, rtol=3e-2), (
        f"mismatch vs reference (max |err|={max_err})"
    )

    print("KERNEL_OK")
</pallas_src>

<mosaic_0001>
module attributes {stable_mosaic.version = 11 : i64} {
  func.func @kernel(%arg0: i32, %arg1: memref<64x128xbf16, #tpu.memory_space<vmem>>, %arg2: memref<128x128xbf16, #tpu.memory_space<vmem>>, %arg3: memref<1x128xf32, #tpu.memory_space<vmem>>, %arg4: memref<1x128xf32, #tpu.memory_space<vmem>>, %arg5: memref<1x128xf32, #tpu.memory_space<vmem>>, %arg6: memref<64x128xbf16, #tpu.memory_space<vmem>>) attributes {dimension_semantics = [#tpu.dimension_semantics<parallel>], iteration_bounds = array<i64: 2>, scalar_prefetch = 0 : i64, scratch_operands = 0 : i64, tpu.core_type = #tpu.core_type<tc>, window_params = [{transform_indices = @transform_0, window_bounds = array<i64: 64, 128>}, {pipeline_mode = #tpu.pipeline_mode<synchronous>, transform_indices = @transform_1, window_bounds = array<i64: 128, 128>}, {pipeline_mode = #tpu.pipeline_mode<synchronous>, transform_indices = @transform_2, window_bounds = array<i64: 1, 128>}, {pipeline_mode = #tpu.pipeline_mode<synchronous>, transform_indices = @transform_3, window_bounds = array<i64: 1, 128>}, {pipeline_mode = #tpu.pipeline_mode<synchronous>, transform_indices = @transform_4, window_bounds = array<i64: 1, 128>}, {transform_indices = @transform_5, window_bounds = array<i64: 64, 128>}]} {
    %c0 = arith.constant 0 : index
    %c0_0 = arith.constant 0 : index
    %0 = vector.load %arg1[%c0, %c0_0] : memref<64x128xbf16, #tpu.memory_space<vmem>>, vector<64x128xbf16>
    %c0_1 = arith.constant 0 : index
    %c0_2 = arith.constant 0 : index
    %1 = vector.load %arg2[%c0_1, %c0_2] : memref<128x128xbf16, #tpu.memory_space<vmem>>, vector<128x128xbf16>
    %cst = arith.constant dense<0.000000e+00> : vector<64x128xf32>
    %2 = tpu.matmul %0, %1, %cst {dimension_numbers = #tpu.dot_dimension_numbers<[1], [0], [0], [1], [0, 0, 1, 1], [], []>} : vector<64x128xbf16>, vector<128x128xbf16>, vector<64x128xf32> -> vector<64x128xf32>
    %c0_3 = arith.constant 0 : index
    %c0_4 = arith.constant 0 : index
    %3 = vector.load %arg3[%c0_3, %c0_4] : memref<1x128xf32, #tpu.memory_space<vmem>>, vector<1x128xf32>
    %4 = vector.broadcast %3 : vector<1x128xf32> to vector<64x128xf32>
    %5 = arith.addf %2, %4 : vector<64x128xf32>
    %6 = arith.extf %0 : vector<64x128xbf16> to vector<64x128xf32>
    %7 = arith.addf %6, %5 : vector<64x128xf32>
    %cst_5 = arith.constant dense<0.000000e+00> : vector<64xf32>
    %8 = vector.multi_reduction <add>, %7, %cst_5 [1] : vector<64x128xf32> to vector<64xf32>
    %9 = vector.shape_cast %8 : vector<64xf32> to vector<64x1xf32>
    %cst_6 = arith.constant 7.812500e-03 : f32
    %10 = vector.broadcast %cst_6 : f32 to vector<64x1xf32>
    %11 = arith.mulf %9, %10 : vector<64x1xf32>
    %12 = vector.broadcast %11 : vector<64x1xf32> to vector<64x128xf32>
    %13 = arith.subf %7, %12 : vector<64x128xf32>
    %14 = arith.mulf %13, %13 : vector<64x128xf32>
    %cst_7 = arith.constant dense<0.000000e+00> : vector<64xf32>
    %15 = vector.multi_reduction <add>, %14, %cst_7 [1] : vector<64x128xf32> to vector<64xf32>
    %16 = vector.shape_cast %15 : vector<64xf32> to vector<64x1xf32>
    %cst_8 = arith.constant 0.00787401571 : f32
    %17 = vector.broadcast %cst_8 : f32 to vector<64x1xf32>
    %18 = arith.mulf %16, %17 : vector<64x1xf32>
    %19 = math.sqrt %18 : vector<64x1xf32>
    %cst_9 = arith.constant 9.99999997E-7 : f32
    %20 = vector.broadcast %cst_9 : f32 to vector<64x1xf32>
    %21 = arith.addf %19, %20 : vector<64x1xf32>
    %cst_10 = arith.constant 1.000000e+00 : f32
    %22 = vector.broadcast %cst_10 : f32 to vector<64x1xf32>
    %23 = arith.divf %22, %21 : vector<64x1xf32>
    %c0_11 = arith.constant 0 : index
    %c0_12 = arith.constant 0 : index
    %24 = vector.load %arg4[%c0_11, %c0_12] : memref<1x128xf32, #tpu.memory_space<vmem>>, vector<1x128xf32>
    %25 = vector.broadcast %23 : vector<64x1xf32> to vector<64x128xf32>
    %26 = arith.mulf %13, %25 : vector<64x128xf32>
    %27 = vector.broadcast %24 : vector<1x128xf32> to vector<64x128xf32>
    %28 = arith.mulf %27, %26 : vector<64x128xf32>
    %c0_13 = arith.constant 0 : index
    %c0_14 = arith.constant 0 : index
    %29 = vector.load %arg5[%c0_13, %c0_14] : memref<1x128xf32, #tpu.memory_space<vmem>>, vector<1x128xf32>
    %30 = vector.broadcast %29 : vector<1x128xf32> to vector<64x128xf32>
    %31 = arith.addf %28, %30 : vector<64x128xf32>
    %32 = arith.truncf %31 : vector<64x128xf32> to vector<64x128xbf16>
    %c0_15 = arith.constant 0 : index
    %c0_16 = arith.constant 0 : index
    %33 = vector.load %arg6[%c0_15, %c0_16] : memref<64x128xbf16, #tpu.memory_space<vmem>>, vector<64x128xbf16>
    tpu.vector_store %arg6[%c0_15, %c0_16], %32 {strides = array<i32>} : memref<64x128xbf16, #tpu.memory_space<vmem>>, vector<64x128xbf16>,
    return
  }
  func.func @transform_0(%arg0: i32) -> (i32, i32) {
    %c0_i32 = arith.constant 0 : i32
    %c0_i32_0 = arith.constant 0 : i32
    return %arg0, %c0_i32 : i32, i32
  }
  func.func @transform_1(%arg0: i32) -> (i32, i32) {
    %c0_i32 = arith.constant 0 : i32
    %c0_i32_0 = arith.constant 0 : i32
    %c0_i32_1 = arith.constant 0 : i32
    return %c0_i32, %c0_i32_0 : i32, i32
  }
  func.func @transform_2(%arg0: i32) -> (i32, i32) {
    %c0_i32 = arith.constant 0 : i32
    %c0_i32_0 = arith.constant 0 : i32
    %c0_i32_1 = arith.constant 0 : i32
    return %c0_i32, %c0_i32_0 : i32, i32
  }
  func.func @transform_3(%arg0: i32) -> (i32, i32) {
    %c0_i32 = arith.constant 0 : i32
    %c0_i32_0 = arith.constant 0 : i32
    %c0_i32_1 = arith.constant 0 : i32
    return %c0_i32, %c0_i32_0 : i32, i32
  }
  func.func @transform_4(%arg0: i32) -> (i32, i32) {
    %c0_i32 = arith.constant 0 : i32
    %c0_i32_0 = arith.constant 0 : i32
    %c0_i32_1 = arith.constant 0 : i32
    return %c0_i32, %c0_i32_0 : i32, i32
  }
  func.func @transform_5(%arg0: i32) -> (i32, i32) {
    %c0_i32 = arith.constant 0 : i32
    %c0_i32_0 = arith.constant 0 : i32
    return %arg0, %c0_i32 : i32, i32
  }
}

</mosaic_0001>

<bundles_post_ra>
// kernel: tpu_custom_call.1
= control target key start
LH: loop header
LB: loop body
LE: loop exit
PB: predicated region body
PF: predicated region fallthrough
CT: control target
= control target key end

     0   :  { %10 = vsyncpa [#allocation3], 0  ;;  %s1434_s0 = inlined_call_operand.hbm [shape: bf16[128,128], index: 0, kind: input, shape index: {}]   ;;  %s1435_s1 = inlined_call_operand.hbm [shape: bf16[128,128], index: 1, kind: input, shape index: {}]   ;;  %s1436_s2 = inlined_call_operand.vmem [shape: f32[1,128], index: 2, kind: input, shape index: {}]   ;;  %s1437_s3 = inlined_call_operand.vmem [shape: f32[1,128], index: 3, kind: input, shape index: {}]   ;;  %s1438_s4 = inlined_call_operand.vmem [shape: f32[1,128], index: 4, kind: input, shape index: {}]   ;;  %s1439_s5 = inlined_call_operand.hbm [shape: bf16[128,128], index: 5, kind: output, shape index: {}]  }
   0x1   :  { %12 = vsyncpa [#allocation3 + $0x1], 0 }
   0x2   :  { %13 = vsyncpa [#allocation6], 0 }
   0x3   :  { %14 = vsyncpa [#allocation4], 0 }
   0x4   :  { %16 = vsyncpa [#allocation4 + $0x1], 0  ;;  %s1158_s18 = smov 0   ;;  %s1160_s19 = smov 0  }
   0x5   :  { %s1162_s20 = smov 0   ;;  %s1164_s21 = smov 0  }
   0x6 LB: > { %s1179_s22 = sadd.s32 4294967295, %s1119_s21   ;;  %s764_s23 = sadd.s32 4294967294, %s1119_s21   ;;  %s1119_s21 = sphi %s1164_s21, %s1463_s21   ;;  %s1115_s20 = sphi %s1162_s20, %s1462_s20   ;;  %s1111_s19 = sphi %s1160_s19, %s1461_s19   ;;  %s1107_s18 = sphi %s1158_s18, %s1460_s18  }
   0x7   : > { %p42_p0 = scmp.ne.s32.totalorder %s1111_s19, %s1107_s18  ;;  %p1440_p1 = scmp.eq.s32.totalorder %s1179_s22, 0 }
   0x8   : > { %p156_p3 = scmp.eq.s32.totalorder %s764_s23, 1  ;;  %p765_p5 = scmp.ge.s32.totalorder %s1119_s21, 1 }
   0x9   : > { %p1188_p4 = por %p1440_p1, %p42_p0  ;;  %p163_p7 = scmp.lt.s32.totalorder %s1119_s21, 3 }
   0xa   : > { %p1193_p6 = por %p156_p3, %p42_p0  ;;  %s1121_s27 = smov [#allocation5]  }
   0xb   : > { %s1445_s24 = scalar_select %p1188_p4, 1, 0 }
   0xc   : > { %s1446_s25 = scalar_select %p1193_p6, 1, 0 }
   0xd   : > { %p1198_p8 = pnand %p765_p5, %p163_p7  ;;  %s175_s28 = sshll.u32 %s1121_s27, 4  ;;  %s176_s28 = int_to_ptr.vmem [resolvable:$true] %s175_s28 }
   0xe   : > { %s1212_s30 = sadd.s32 1, %s1119_s21   ;;  %s29_s6 = sadd.s32 1, %s1115_s20 }
   0xf   : > { %s1447_s26 = scalar_select %p1198_p8, 1, 0 }
  0x10   : > { %p896_p9 = pneg %p1198_p8  ;;  %s26_s7 = ssub.s32 %s1119_s21, %s1212_s30 }
  0x11   : > { %s1008_s8 = scalar_lea.vmem %s176_s28, 1024  ;;  %p1016_p5 = scmp.lt.s32.totalorder %s176_s28, %s176_s28 }
  0x12   : > { %p1207_p11 = pnand %p896_p9, %p1440_p1  ;;  %p1009_p13 = scmp.ne.s32.totalorder %s176_s28, %s1008_s8 }
  0x13   : > { %p1017_p7 = scmp.lt.s32.totalorder %s1008_s8, %s1008_s8 }
  0x14   : > { %p999_p12 = pneg %p1207_p11 }
  0x15   : > { %p1018_p10 = por %p1017_p7, %p1016_p5 }
  0x16   : > { %p1011_p0 = pnand %p1009_p13, %p999_p12 }
  0x18   : > { %p1012_p3 = pneg %p1011_p0 }
  0x1a   : > { %p1019_p2 = pnand %p1018_p10, %p1012_p3 }
  0x1c   : > { %1022 = shalt.err (!%p1019_p2)
}
  0x1d   : > { %s1441_s9 = smov 64   ;;  %s1123_s10 = smov 4  }
  0x1e   : > { %899 = dma.hbm_to_vmem [thread:$0]  (!%p1207_p11), %s1435_s1, 1024, %s176_s28, [#allocation6], %s1441_s9, %s1441_s9, %s1123_s10  }
  0x1f   : > { %p27_p2 = scmp.eq.s32.totalorder %s26_s7, 0  ;;  %p36_p9 = scmp.ne.s32.totalorder %s1115_s20, %s1111_s19 }
  0x20   : > { %p37_p10 = scmp.eq.s32.totalorder %s1119_s21, 0  ;;  %p909_p12 = scmp.lt.s32.totalorder %s1119_s21, 2 }
  0x21   : > { %s1232_s13 = scalar_select %p27_p2, %s1115_s20, %s29_s6  }
  0x22   : > { %p38_p13 = por %p37_p10, %p36_p9  ;;  %p1449_p0 = scmp.eq.s32.totalorder %s1179_s22, 1 }
  0x23   : > { %s198_s15 = sand.u32 1, %s1115_s20   ;;  %s803_s16 = sshll.u32 %s1119_s21, 9 }
  0x24   : > { %p1236_p3 = por %p1449_p0, %p36_p9  ;;  %s768_s17 = sshll.u32 %s198_s15, 5 }
  0x25   : > { %s1245_s29 = scalar_lea.hbm %s1434_s0, %s803_s16  ;;  %s202_s28 = scalar_lea.vmem [#allocation2], %s768_s17 }
  0x26   : > { %s1450_s14 = scalar_select %p1236_p3, 1, 0 }
  0x27   : > { %s209_s6 = sshll.u32 %s202_s28, 4  ;;  %p1247_p11 = pnand %p909_p12, %p38_p13  ;;  %s1251_s6 = int_to_ptr.vmem [resolvable:$true] %s209_s6 }
  0x28   : > { %s1253_s8 = scalar_lea.sflag [#allocation3], %s198_s15  ;;  %s1023_s11 = scalar_lea.hbm %s1245_s29, 512 }
  0x29   : > { %p1024_p5 = scmp.ne.s32.totalorder %s1245_s29, %s1023_s11  ;;  %p1025_p7 = pneg %p1247_p11 }
  0x2a   : > { %s1028_s17 = scalar_lea.hbm %s1434_s0, 1024  ;;  %p1029_p10 = scmp.lt.s32.totalorder %s1245_s29, %s1434_s0 }
  0x2b   : > { %p1026_p2 = pnand %p1025_p7, %p1024_p5  ;;  %p1030_p12 = scmp.lt.s32.totalorder %s1028_s17, %s1023_s11 }
  0x2d   : > { %p1027_p9 = pneg %p1026_p2  ;;  %p1031_p13 = por %p1030_p12, %p1029_p10 }
  0x2f   : > { %p1032_p0 = pnand %p1031_p13, %p1027_p9 }
  0x31   : > { %1035 = shalt.err (!%p1032_p0)
}
  0x32   : > { %s1036_s15 = scalar_lea.vmem %s1251_s6, 512  ;;  %s1124_s28 = smov [#allocation2]  }
  0x33   : > { %p1037_p1 = scmp.ne.s32.totalorder %s1251_s6, %s1036_s15  ;;  %s1041_s9 = sshll.u32 %s1124_s28, 4  ;;  %s1042_s9 = int_to_ptr.vmem [resolvable:$false] %s1041_s9 }
  0x34   : > { %s1043_s12 = scalar_lea.vmem %s1042_s9, 1024  ;;  %p1044_p2 = scmp.lt.s32.totalorder %s1251_s6, %s1042_s9 }
  0x35   : > { %p1039_p6 = pnand %p1037_p1, %p1025_p7  ;;  %p1045_p3 = scmp.lt.s32.totalorder %s1043_s12, %s1036_s15 }
  0x37   : > { %p1040_p5 = pneg %p1039_p6  ;;  %p1046_p4 = por %p1045_p3, %p1044_p2 }
  0x39   : > { %p1047_p8 = pnand %p1046_p4, %p1040_p5 }
  0x3b   : > { %1050 = shalt.err (!%p1047_p8)
}
  0x3c   : > { %s1452_s11 = smov 64   ;;  %p1453_p1 = scmp.ne.s32.totalorder %s1447_s26, 0 }
  0x3d   : > { %903 = dma.hbm_to_vmem [thread:$0]  (!%p1247_p11), %s1245_s29, 512, %s1251_s6, %s1253_s8, %s1452_s11, %s1452_s11, %s1123_s10  }
  0x3e   : > { %221 = sbr.rel (%p1453_p1) target bundleno = 659 (0x293), region = 40  ;;  %s1280_s16 = sand.u32 (!%p1453_p1), 1, %s1111_s19  }
  0x3f   : > { %s772_s9 = sshll.u32 (!%p1453_p1), %s1280_s16, 5  ;;  %s224_s17 = scalar_lea.sflag (!%p1453_p1), [#allocation3], %s1280_s16 }
  0x40   : > { %s1286_s7 = scalar_lea.vmem (!%p1453_p1), [#allocation2], %s772_s9  ;;  %p1454_p4 = scmp.ne.s32.totalorder (!%p1453_p1), %s1445_s24, 0 }
  0x43   : > { %1094 = dma.done.wait (%p1454_p4), %s224_s17, 512  }
  0x44   : > { %1096 = vsyncadd (%p1454_p4), %s224_s17, 4294966784  ;;  %p1455_p6 = scmp.eq.s32.totalorder %s1179_s22, 0 }
  0x46   : > { %1098 = dma.done.wait (%p1455_p6), [#allocation6], 1024   ;;  %p1456_p8 = pmov %p1455_p6 }
  0x47   : > { %v949_v0 = vld [vmem:[#allocation5 + $0x38] sm:$0xff]   ;;  %v950_v1 = vld [vmem:[#allocation5 + $0x30] sm:$0xff]   ;;  %v951_v2 = vld [vmem:[#allocation5 + $0x28] sm:$0xff]   ;;  %s257_s23 = scalar_lea.vmem [#allocation7], %s772_s9  ;;  %s812_s27 = sshll.u32 %s1179_s22, 9 }
  0x48   : > { %1100 = vsyncadd (%p1456_p8), [#allocation6], 4294966272  ;;  %848 = vmatprep.subr.bf16.mxu0 %v949_v0  ;;  %872 = vmatprep.subr.bf16.mxu1 %v949_v0  ;;  %v952_v3 = vld [vmem:[#allocation5 + $0x20] sm:$0xff]   ;;  %v1300_v5 = vld [vmem:[%s1286_s7 + $0x10] sm:$0xff]   ;;  %s681_s15 = sshll.u32 %s257_s23, 4  ;;  %s1389_s11 = scalar_lea.hbm %s1439_s5, %s812_s27  ;;  %s1391_s15 = int_to_ptr.vmem [resolvable:$true] %s681_s15 }
  0x49   : > { %849 = vmatpush3.bf16.msra.mxu0 %v949_v0  ;;  %880 = vmatpush3.bf16.msra.mxu1 %v949_v0  ;;  %v1297_v4 = vld [vmem:[%s1286_s7] sm:$0xff]   ;;  %v953_v6 = vld [vmem:[#allocation5 + $0x18] sm:$0xff]   ;;  %v954_v7 = vld [vmem:[#allocation5 + $0x10] sm:$0xff]   ;;  %v433_v25 = vunpack.c.l.bf16 %v1300_v5  ;;  %v434_v31 = vunpack.c.h.bf16 %v1300_v5  ;;  %s668_s9 = scalar_lea.sflag [#allocation4], %s1280_s16  ;;  %s1051_s17 = scalar_lea.vmem %s1391_s15, 512 }
  0x4a   : > { %850 = vmatprep.subr.bf16.mxu0 %v950_v1  ;;  %873 = vmatprep.subr.bf16.mxu1 %v950_v1  ;;  %v955_v8 = vld [vmem:[#allocation5 + $0x8] sm:$0xff]   ;;  %v956_v9 = vld [vmem:[#allocation5] sm:$0xff]   ;;  %v267_v11 = vld [vmem:[%s1286_s7 + $0x18] sm:$0xff]   ;;  %v429_v16 = vunpack.c.l.bf16 %v1297_v4  ;;  %v430_v34 = vunpack.c.h.bf16 %v1297_v4  ;;  %p1052_p3 = scmp.ne.s32.totalorder %s1391_s15, %s1051_s17  ;;  %p1457_p11 = scmp.ne.s32.totalorder %s1450_s14, 0 }
  0x4b   : > { %864 = vmatprep.mubr.bf16.mxu0 %v1297_v4  ;;  %868 = vmatprep.mubr.bf16.mxu1 %v1300_v5  ;;  %v263_v10 = vld [vmem:[%s1286_s7 + $0x8] sm:$0xff]   ;;  %v775_v12 = vld [vmem:[%s1436_s2] ss:$0 sm:$0xff]  ;;  %v436_v39 = vunpack.c.h.bf16 %v267_v11  ;;  %v435_v42 = vunpack.c.l.bf16 %v267_v11  ;;  %s1125_s22 = smov [#allocation7]  }
  0x4c   : > { %v431_v13 = vunpack.c.l.bf16 %v263_v10  ;;  %v432_v22 = vunpack.c.h.bf16 %v263_v10  ;;  %p1053_p7 = pnand %p1052_p3, %p1457_p11  ;;  %s1055_s7 = sshll.u32 %s1125_s22, 4  ;;  %s1056_s7 = int_to_ptr.vmem [resolvable:$false] %s1055_s7 }
  0x4d   : > { %851 = vmatpush3.bf16.msra.mxu0 %v950_v1  ;;  %881 = vmatpush3.bf16.msra.mxu1 %v950_v1  ;;  %s1057_s24 = scalar_lea.vmem %s1056_s7, 1024  ;;  %p1058_p10 = scmp.lt.s32.totalorder %s1391_s15, %s1056_s7 }
  0x4e   : > { %852 = vmatprep.subr.bf16.mxu0 %v951_v2  ;;  %874 = vmatprep.subr.bf16.mxu1 %v951_v2  ;;  %p1054_p9 = pneg %p1053_p7  ;;  %p1059_p12 = scmp.lt.s32.totalorder %s1057_s24, %s1051_s17 }
  0x50   : > { %p1060_p13 = por %p1059_p12, %p1058_p10 }
  0x51   : > { %853 = vmatpush3.bf16.msra.mxu0 %v951_v2  ;;  %882 = vmatpush3.bf16.msra.mxu1 %v951_v2 }
  0x52   : > { %854 = vmatprep.subr.bf16.mxu0 %v952_v3  ;;  %875 = vmatprep.subr.bf16.mxu1 %v952_v3  ;;  %p1061_p0 = pnand %p1060_p13, %p1054_p9 }
  0x55   : > { %855 = vmatpush3.bf16.msra.mxu0 %v952_v3  ;;  %883 = vmatpush3.bf16.msra.mxu1 %v952_v3 }
  0x56   : > { %856 = vmatprep.subr.bf16.mxu0 %v953_v6  ;;  %876 = vmatprep.subr.bf16.mxu1 %v953_v6 }
  0x59   : > { %857 = vmatpush3.bf16.msra.mxu0 %v953_v6  ;;  %884 = vmatpush3.bf16.msra.mxu1 %v953_v6 }
  0x5a   : > { %858 = vmatprep.subr.bf16.mxu0 %v954_v7  ;;  %877 = vmatprep.subr.bf16.mxu1 %v954_v7 }
  0x5d   : > { %859 = vmatpush3.bf16.msra.mxu0 %v954_v7  ;;  %885 = vmatpush3.bf16.msra.mxu1 %v954_v7 }
  0x5e   : > { %860 = vmatprep.subr.bf16.mxu0 %v955_v8  ;;  %878 = vmatprep.subr.bf16.mxu1 %v955_v8 }
  0x61   : > { %861 = vmatpush3.bf16.msra.mxu0 %v955_v8  ;;  %886 = vmatpush3.bf16.msra.mxu1 %v955_v8 }
  0x62   : > { %862 = vmatprep.subr.bf16.mxu0 %v956_v9  ;;  %879 = vmatprep.subr.bf16.mxu1 %v956_v9 }
  0x65   : > { %863 = vmatpush3.bf16.msra.mxu0 %v956_v9  ;;  %887 = vmatpush3.bf16.msra.mxu1 %v956_v9 }
  0x68   : > { %865 = vmatmul.mubr.bf16.vlgmr.msra.gmra.mxu0 %v263_v10  ;;  %869 = vmatmul.mubr.bf16.vlgmr.msra.gmra.mxu1 %v267_v11 }
 0x128   : > { %v866_v14 = vpop.f32.mrf.mxu0  ;;  %v870_v15 = vpop.f32.mrf.mxu1 }
 0x129   : > { %v407_v17 = vadd.f32 %v866_v14, %v775_v12  ;;  %v423_v40 = vadd.f32 %v870_v15, %v775_v12 }
 0x12a   : > { %v398_v18 = vpop.f32.mrf.mxu0  ;;  %v414_v19 = vpop.f32.mrf.mxu1 }
 0x12b   : > { %v399_v20 = vadd.f32 %v775_v12, %v398_v18  ;;  %v439_v21 = vadd.f32 %v431_v13, %v407_v17  ;;  %v415_v26 = vadd.f32 %v775_v12, %v414_v19  ;;  %v443_v44 = vadd.f32 %v435_v42, %v423_v40 }
 0x12c   : > { %v867_v23 = vpop.f32.mrf.mxu0  ;;  %v871_v24 = vpop.f32.mrf.mxu1 }
 0x12d   : > { %v410_v27 = vadd.f32 %v867_v23, %v775_v12  ;;  %449 = vadd.xlane.f32.xlu1 %v439_v21  ;;  %v437_v28 = vadd.f32 %v429_v16, %v399_v20  ;;  %v441_v36 = vadd.f32 %v433_v25, %v415_v26  ;;  %v426_v37 = vadd.f32 %v871_v24, %v775_v12 }
 0x12e   : > { %v401_v29 = vpop.f32.mrf.mxu0  ;;  %v417_v30 = vpop.f32.mrf.mxu1 }
 0x12f   : > { %v418_v32 = vadd.f32 %v775_v12, %v417_v30  ;;  %445 = vadd.xlane.f32.xlu0 %v437_v28  ;;  %v440_v33 = vadd.f32 %v432_v22, %v410_v27  ;;  %v402_v35 = vadd.f32 %v775_v12, %v401_v29  ;;  %v444_v43 = vadd.f32 %v436_v39, %v426_v37 }
 0x131   : > { %451 = vadd.xlane.f32.xlu1 %v440_v33  ;;  %v442_v38 = vadd.f32 %v434_v31, %v418_v32  ;;  %v438_v41 = vadd.f32 %v430_v34, %v402_v35 }
 0x133   : > { %453 = vadd.xlane.f32.xlu0 %v441_v36 }
 0x135   : > { %455 = vadd.xlane.f32.xlu1 %v442_v38 }
 0x137   : > { %447 = vadd.xlane.f32.xlu0 %v438_v41 }
 0x139   : > { %459 = vadd.xlane.f32.xlu1 %v444_v43 }
 0x13b   : > { %457 = vadd.xlane.f32.xlu0 %v443_v44 }
 0x1b6   : > { %v450_v45 = vpop.xlane.xlu1 %449 }
 0x1b7   : > { %v463_v46 = vmul.f32 0.0078125, %v450_v45 }
 0x1b8   : > { %v446_v47 = vpop.xlane.xlu0 %445 }
 0x1b9   : > { %v1313_v48 = vsub.f32 %v439_v21, %v463_v46  ;;  %v461_v49 = vmul.f32 0.0078125, %v446_v47 }
 0x1ba   : > { %v452_v50 = vpop.xlane.xlu1 %451 }
 0x1bb   : > { %v1315_v51 = vsub.f32 %v437_v28, %v461_v49  ;;  %v464_v52 = vmul.f32 0.0078125, %v452_v50  ;;  %v479_v53 = vmul.f32 %v1313_v48, %v1313_v48 }
 0x1bc   : > { %v454_v54 = vpop.xlane.xlu0 %453 }
 0x1bd   : > { %v1319_v55 = vsub.f32 %v440_v33, %v464_v52  ;;  %v465_v56 = vmul.f32 0.0078125, %v454_v54  ;;  %489 = vadd.xlane.f32.xlu0 %v479_v53  ;;  %v477_v60 = vmul.f32 %v1315_v51, %v1315_v51 }
 0x1be   : > { %v456_v57 = vpop.xlane.xlu1 %455 }
 0x1bf   : > { %v1321_v58 = vsub.f32 %v441_v36, %v465_v56  ;;  %v480_v59 = vmul.f32 %v1319_v55, %v1319_v55  ;;  %v466_v62 = vmul.f32 0.0078125, %v456_v57 }
 0x1c0   : > { %v448_v61 = vpop.xlane.xlu0 %447 }
 0x1c1   : > { %v462_v63 = vmul.f32 0.0078125, %v448_v61  ;;  %491 = vadd.xlane.f32.xlu1 %v480_v59  ;;  %485 = vadd.xlane.f32.xlu0 %v477_v60  ;;  %v481_v2 = vmul.f32 %v1321_v58, %v1321_v58  ;;  %v1331_v4 = vsub.f32 %v442_v38, %v466_v62 }
 0x1c2   : > { %v460_v0 = vpop.xlane.xlu1 %459 }
 0x1c3   : > { %v1327_v1 = vsub.f32 %v438_v41, %v462_v63  ;;  %v468_v5 = vmul.f32 0.0078125, %v460_v0  ;;  %v482_v10 = vmul.f32 %v1331_v4, %v1331_v4 }
 0x1c4   : > { %v458_v3 = vpop.xlane.xlu0 %457 }
 0x1c5   : > { %v467_v6 = vmul.f32 0.0078125, %v458_v3  ;;  %493 = vadd.xlane.f32.xlu0 %v481_v2  ;;  %v478_v7 = vmul.f32 %v1327_v1, %v1327_v1  ;;  %v1337_v9 = vsub.f32 %v444_v43, %v468_v5 }
 0x1c7   : > { %v1335_v8 = vsub.f32 %v443_v44, %v467_v6  ;;  %487 = vadd.xlane.f32.xlu1 %v478_v7  ;;  %v484_v12 = vmul.f32 %v1337_v9, %v1337_v9 }
 0x1c9   : > { %v483_v11 = vmul.f32 %v1335_v8, %v1335_v8 }
 0x1cb   : > { %495 = vadd.xlane.f32.xlu1 %v482_v10  ;;  %497 = vadd.xlane.f32.xlu0 %v483_v11 }
 0x1cf   : > { %499 = vadd.xlane.f32.xlu1 %v484_v12 }
 0x246   : > { %v490_v13 = vpop.xlane.xlu0 %489 }
 0x247   : > { %v503_v14 = vmul.f32 0.007874016, %v490_v13 }
 0x249   : > { %965 = vrsqrt.f32 %v503_v14  ;;  %vm525_vm0 = vcmp.eq.f32.partialorder %v503_v14, inf  ;;  %v528_v29 = vand.u32 2147483648, %v503_v14  ;;  %vm527_vm1 = vcmp.eq.f32.partialorder %v503_v14, 0.0 }
 0x24a   : > { %v492_v15 = vpop.xlane.xlu1 %491  ;;  %v486_v16 = vpop.xlane.xlu0 %485 }
 0x24b   : > { %v504_v17 = vmul.f32 0.007874016, %v492_v15  ;;  %v501_v18 = vmul.f32 0.007874016, %v486_v16 }
 0x24d   : > { %967 = vrsqrt.f32 %v504_v17  ;;  %vm532_vm2 = vcmp.eq.f32.partialorder %v504_v17, inf  ;;  %vm534_vm3 = vcmp.eq.f32.partialorder %v504_v17, 0.0  ;;  %v535_v38 = vand.u32 2147483648, %v504_v17 }
 0x24e   : > { %969 = vrsqrt.f32 %v501_v18  ;;  %v494_v19 = vpop.xlane.xlu0 %493  ;;  %vm511_vm4 = vcmp.eq.f32.partialorder %v501_v18, inf  ;;  %v514_v41 = vand.u32 2147483648, %v501_v18  ;;  %vm513_vm5 = vcmp.eq.f32.partialorder %v501_v18, 0.0 }
 0x24f   : > { %v505_v20 = vmul.f32 0.007874016, %v494_v19 }
 0x250   : > { %v488_v21 = vpop.xlane.xlu1 %487 }
 0x251   : > { %971 = vrsqrt.f32 %v505_v20  ;;  %v502_v22 = vmul.f32 0.007874016, %v488_v21  ;;  %vm539_vm6 = vcmp.eq.f32.partialorder %v505_v20, inf  ;;  %v542_v50 = vand.u32 2147483648, %v505_v20 }
 0x252   : > { %vm541_vm7 = vcmp.eq.f32.partialorder %v505_v20, 0.0 }
 0x253   : > { %973 = vrsqrt.f32 %v502_v22  ;;  %vm518_vm8 = vcmp.eq.f32.partialorder %v502_v22, inf  ;;  %v521_v59 = vand.u32 2147483648, %v502_v22  ;;  %vm520_vm9 = vcmp.eq.f32.partialorder %v502_v22, 0.0 }
 0x254   : > { %v496_v23 = vpop.xlane.xlu1 %495  ;;  %v498_v24 = vpop.xlane.xlu0 %497 }
 0x255   : > { %v1345_v25 = vmul.f32 0.007874016, %v496_v23  ;;  %v1347_v26 = vmul.f32 0.007874016, %v498_v24 }
 0x256   : > { %v966_v27 = vpop.eup %965 }
 0x257   : > { %v524_v28 = vmul.f32 %v966_v27, %v503_v14  ;;  %975 = vrsqrt.f32 %v1345_v25  ;;  %vm546_vm10 = vcmp.eq.f32.partialorder %v1345_v25, inf  ;;  %v549_v3 = vand.u32 2147483648, %v1345_v25 }
 0x258   : > { %977 = vrsqrt.f32 %v1347_v26  ;;  %v500_v30 = vpop.xlane.xlu1 %499  ;;  %vm548_vm11 = vcmp.eq.f32.partialorder %v1345_v25, 0.0  ;;  %vm553_vm12 = vcmp.eq.f32.partialorder %v1347_v26, inf  ;;  %v556_v7 = vand.u32 2147483648, %v1347_v26 }
 0x259   : > { %v526_v31 = vsel %vm525_vm0, %v503_v14, %v524_v28  ;;  %v1351_v32 = vmul.f32 0.007874016, %v500_v30  ;;  %vm555_vm13 = vcmp.eq.f32.partialorder %v1347_v26, 0.0  ;;  %v789_v28 = vld [vmem:[%s1438_s4] ss:$0 sm:$0xff] }
 0x25a   : > { %v968_v33 = vpop.eup %967  ;;  %v529_v34 = vsel %vm527_vm1, %v528_v29, %v526_v31 }
 0x25b   : > { %v970_v35 = vpop.eup %969  ;;  %v567_v36 = vadd.f32 1e-06, %v529_v34  ;;  %v531_v37 = vmul.f32 %v968_v33, %v504_v17  ;;  %979 = vrsqrt.f32 %v1351_v32  ;;  %vm560_vm14 = vcmp.eq.f32.partialorder %v1351_v32, inf }
 0x25c   : > { %v510_v39 = vmul.f32 %v970_v35, %v501_v18  ;;  %vm562_vm15 = vcmp.eq.f32.partialorder %v1351_v32, 0.0 }
 0x25d   : > { %981 = vrcp.f32 %v567_v36  ;;  %v533_v40 = vsel %vm532_vm2, %v504_v17, %v531_v37 }
 0x25e   : > { %v972_v42 = vpop.eup %971  ;;  %v536_v43 = vsel %vm534_vm3, %v535_v38, %v533_v40  ;;  %v512_v44 = vsel %vm511_vm4, %v501_v18, %v510_v39  ;;  %v563_v18 = vand.u32 2147483648, %v1351_v32 }
 0x25f   : > { %v568_v45 = vadd.f32 1e-06, %v536_v43  ;;  %v515_v46 = vsel %vm513_vm5, %v514_v41, %v512_v44  ;;  %v538_v47 = vmul.f32 %v972_v42, %v505_v20 }
 0x260   : > { %v565_v49 = vadd.f32 1e-06, %v515_v46  ;;  %v974_v52 = vpop.eup %973 }
 0x261   : > { %983 = vrcp.f32 %v568_v45  ;;  %v540_v53 = vsel %vm539_vm6, %v505_v20, %v538_v47  ;;  %v517_v56 = vmul.f32 %v974_v52, %v502_v22 }
 0x262   : > { %985 = vrcp.f32 %v565_v49  ;;  %v543_v54 = vsel %vm541_vm7, %v542_v50, %v540_v53 }
 0x263   : > { %v569_v57 = vadd.f32 1e-06, %v543_v54  ;;  %v519_v61 = vsel %vm518_vm8, %v502_v22, %v517_v56  ;;  %v788_v22 = vld [vmem:[%s1437_s3] ss:$0 sm:$0xff] }
 0x264   : > { %v976_v60 = vpop.eup %975  ;;  %v522_v63 = vsel %vm520_vm9, %v521_v59, %v519_v61 }
 0x265   : > { %v978_v62 = vpop.eup %977  ;;  %987 = vrcp.f32 %v569_v57  ;;  %v545_v0 = vmul.f32 %v976_v60, %v1345_v25  ;;  %v566_v2 = vadd.f32 1e-06, %v522_v63 }
 0x266   : > { %v552_v5 = vmul.f32 %v978_v62, %v1347_v26 }
 0x267   : > { %v547_v6 = vsel %vm546_vm10, %v1345_v25, %v545_v0  ;;  %989 = vrcp.f32 %v566_v2 }
 0x268   : > { %v980_v10 = vpop.eup %979  ;;  %v550_v11 = vsel %vm548_vm11, %v549_v3, %v547_v6  ;;  %v554_v12 = vsel %vm553_vm12, %v1347_v26, %v552_v5 }
 0x269   : > { %v570_v13 = vadd.f32 1e-06, %v550_v11  ;;  %v557_v14 = vsel %vm555_vm13, %v556_v7, %v554_v12  ;;  %v559_v15 = vmul.f32 %v980_v10, %v1351_v32 }
 0x26a   : > { %v982_v16 = vpop.eup %981  ;;  %v571_v17 = vadd.f32 1e-06, %v557_v14 }
 0x26b   : > { %991 = vrcp.f32 %v570_v13  ;;  %v561_v19 = vsel %vm560_vm14, %v1351_v32, %v559_v15  ;;  %v592_v20 = vmul.f32 %v982_v16, %v1313_v48 }
 0x26c   : > { %993 = vrcp.f32 %v571_v17  ;;  %v564_v21 = vsel %vm562_vm15, %v563_v18, %v561_v19 }
 0x26d   : > { %v572_v23 = vadd.f32 1e-06, %v564_v21  ;;  %v606_v27 = vmul.f32 %v788_v22, %v592_v20 }
 0x26e   : > { %v984_v24 = vpop.eup %983 }
 0x26f   : > { %v986_v25 = vpop.eup %985  ;;  %995 = vrcp.f32 %v572_v23  ;;  %v593_v26 = vmul.f32 %v984_v24, %v1319_v55  ;;  %v621_v31 = vadd.f32 %v789_v28, %v606_v27 }
 0x270   : > { %v590_v30 = vmul.f32 %v986_v25, %v1315_v51 }
 0x271   : > { %v607_v29 = vmul.f32 %v788_v22, %v593_v26 }
 0x272   : > { %v988_v48 = vpop.eup %987  ;;  %v604_v37 = vmul.f32 %v788_v22, %v590_v30 }
 0x273   : > { %v622_v32 = vadd.f32 %v789_v28, %v607_v29  ;;  %v594_v34 = vmul.f32 %v988_v48, %v1321_v58 }
 0x274   : > { %v990_v33 = vpop.eup %989  ;;  %v619_v42 = vadd.f32 %v789_v28, %v604_v37 }
 0x275   : > { %v821_v35 = vpack.c.bf16 %v622_v32, %v621_v31  ;;  %v591_v36 = vmul.f32 %v990_v33, %v1327_v1  ;;  %v608_v41 = vmul.f32 %v788_v22, %v594_v34 }
 0x277   : > { %833 = vst [vmem:[%s257_s23 + $0x8] sm:$0xff] %v821_v35   ;;  %v605_v38 = vmul.f32 %v788_v22, %v591_v36  ;;  %v623_v47 = vadd.f32 %v789_v28, %v608_v41 }
 0x278   : > { %v992_v55 = vpop.eup %991 }
 0x279   : > { %v994_v39 = vpop.eup %993  ;;  %v595_v40 = vmul.f32 %v992_v55, %v1331_v4  ;;  %v620_v43 = vadd.f32 %v789_v28, %v605_v38 }
 0x27a   : > { %v596_v51 = vmul.f32 %v994_v39, %v1335_v8 }
 0x27b   : > { %v609_v44 = vmul.f32 %v788_v22, %v595_v40  ;;  %v816_v45 = vpack.c.bf16 %v620_v43, %v619_v42 }
 0x27c   : > { %v996_v58 = vpop.eup %995  ;;  %v610_v46 = vmul.f32 %v788_v22, %v596_v51 }
 0x27d   : > { %v597_v1 = vmul.f32 %v996_v58, %v1337_v9  ;;  %v624_v49 = vadd.f32 %v789_v28, %v609_v44  ;;  %817 = vst [vmem:[%s257_s23] sm:$0xff] %v816_v45  }
 0x27e   : > { %v625_v4 = vadd.f32 %v789_v28, %v610_v46 }
 0x27f   : > { %v611_v50 = vmul.f32 %v788_v22, %v597_v1  ;;  %v826_v52 = vpack.c.bf16 %v624_v49, %v623_v47 }
 0x281   : > { %v626_v53 = vadd.f32 %v789_v28, %v611_v50  ;;  %834 = vst [vmem:[%s257_s23 + $0x10] sm:$0xff] %v826_v52  }
 0x283   : > { %v831_v8 = vpack.c.bf16 %v626_v53, %v625_v4 }
 0x285   : > { %835 = vst [vmem:[%s257_s23 + $0x18] sm:$0xff] %v831_v8  }
 0x286   : > { %1064 = shalt.err (!%p1061_p0)
}
 0x287   : > { %s1065_s26 = scalar_lea.hbm %s1389_s11, 512  ;;  %s1069_s6 = scalar_lea.hbm %s1439_s5, 1024 }
 0x288   : > { %p1066_p5 = scmp.ne.s32.totalorder %s1389_s11, %s1065_s26  ;;  %p1070_p4 = scmp.lt.s32.totalorder %s1389_s11, %s1439_s5 }
 0x289   : > { %p1071_p6 = scmp.lt.s32.totalorder %s1069_s6, %s1065_s26 }
 0x28a   : > { %p1067_p2 = pnand %p1066_p5, %p1457_p11 }
 0x28b   : > { %p1072_p8 = por %p1071_p6, %p1070_p4 }
 0x28c   : > { %p1068_p1 = pneg %p1067_p2 }
 0x28e   : > { %p1073_p3 = pnand %p1072_p8, %p1068_p1 }
 0x290   : > { %1076 = shalt.err (!%p1073_p3)
}
 0x291   : > { %s1126_s27 = smov 64   ;;  %s1127_s28 = smov 4  }
 0x292   : > { %894 = dma.vmem_to_hbm [thread:$0]  (%p1457_p11), %s1391_s15, 512, %s1389_s11, %s668_s9, %s1126_s27, %s1126_s27, %s1127_s28  }
 0x293 PF: > { %s696_s12 = sand.u32 1, %s1107_s18   ;;  %p1458_p7 = scmp.ne.s32.totalorder %s1446_s25, 0 }
 0x294   : > { %p1459_p9 = scmp.ge.s32.totalorder %s1119_s21, 2  ;;  %s697_s17 = scalar_lea.sflag [#allocation4], %s696_s12 }
 0x296   : > { %p905_p10 = pnand %p1459_p9, %p1458_p7 }
 0x298   : > { %p906_p12 = pneg %p905_p10 }
 0x29a   : > { %1102 = dma.done.wait (%p906_p12), %s697_s17, 512  }
 0x29b   : > { %1104 = vsyncadd (%p906_p12), %s697_s17, 4294966784  ;;  %p19_p13 = scmp.ge.s32.totalorder %s1212_s30, 4   ;;  %s1460_s18 = smov %s1111_s19 }
 0x29c   : > { %s1461_s19 = smov %s1115_s20  ;;  %s1462_s20 = smov %s1232_s13 }
 0x29d   : > { %s1463_s21 = smov %s1212_s30  ;;  %21 = sbr.rel (!%p19_p13) target bundleno = 6 (0x6), region = 89 }
 0x2a2   :  { %702 = vsyncpa [#allocation3], 1 }
 0x2a3   :  { %704 = vsyncpa [#allocation3 + $0x1], 1 }
 0x2a4   :  { %705 = vsyncpa [#allocation6], 1 }
 0x2a5   :  { %706 = vsyncpa [#allocation4], 1 }
 0x2a6   :  { %708 = vsyncpa [#allocation4 + $0x1], 1 }

</bundles_post_ra>
